<compile_context>
chip_gen: v5e
topology: v5e:2x2
jax: 0.10.0
libtpu: 0.0.40
codegen_flags: <defaults>
</compile_context>

<pallas_src>
import jax
import jax.numpy as jnp
from jax.experimental import pallas as pl
from jax.experimental.pallas import tpu as pltpu

HIDDEN = 128  # hidden width fixed by the module definition


def _round_up(n, m):
    return ((n + m - 1) // m) * m


# ----------------------------------------------------------------------------
# Pallas kernel: one batch tile of the full forward pass.
# ----------------------------------------------------------------------------
def rainbow_kernel(x_ref,     # (TILE_B, S)            f32
                   wf_ref,    # (S, 128)               f32 or bf16
                   wva_ref,   # (128, 256) = [wv1|wa1] f32 or bf16
                   wout_ref,  # (256, 128) dueling-combined output head
                   b_ref,     # (1, 512)   = [bf | bv1|ba1 | b_out]   f32
                   q_ref):    # (TILE_B, 128)  lanes [0, A) hold Q    f32
    H = HIDDEN
    w_dtype = wf_ref.dtype  # matmul operand dtype (f32 or bf16)

    # Static slices of the packed bias row (128-lane aligned -> free).
    bf = b_ref[:, 0:H]               # (1, 128)
    bva = b_ref[:, H:3 * H]          # (1, 256)
    bout = b_ref[:, 3 * H:4 * H]     # (1, 128)

    # feature = ReLU(x @ Wf + bf)    (K = state_dim, massively underfills MXU)
    x = x_ref[...].astype(w_dtype)
    h = jnp.dot(x, wf_ref[...], preferred_element_type=jnp.float32) + bf
    h = jnp.maximum(h, 0.0)          # f32 elementwise (v5e-safe)

    # Fused value/advantage hidden layer: [vh | ah] = ReLU(h @ [wv1|wa1] + b)
    hva = jnp.dot(h.astype(w_dtype), wva_ref[...],
                  preferred_element_type=jnp.float32) + bva
    hva = jnp.maximum(hva, 0.0)      # (TILE_B, 256)

    # Output head with the dueling combine pre-baked into the weights:
    # lanes [0, A) already equal V + A - mean_a(A); lanes [A, 128) are zero.
    q_ref[...] = (jnp.dot(hva.astype(w_dtype), wout_ref[...],
                          preferred_element_type=jnp.float32) + bout
                  ).astype(q_ref.dtype)


def rainbow_forward(x, fp, *, tile_b=256):
    """x: (B, state_dim) f32.  fp: packed params from pack_params()."""
    B, S = x.shape
    A = fp["action_dim"]
    H = HIDDEN

    # Batch tile: multiple of 8 sublanes.  Keep >= 2 grid steps when there is
    # enough work so both v7x TensorCores are used ('parallel' axis sharding);
    # on v5e/v6e (1 TC) this is a no-op.
    n_split = 2 if B >= 128 else 1
    tb = max(8, min(_round_up(tile_b, 8), _round_up(pl.cdiv(B, n_split), 8)))
    grid = (pl.cdiv(B, tb),)  # cdiv grid: last tile may be partial (no x pad)

    q128 = pl.pallas_call(
        rainbow_kernel,
        out_shape=jax.ShapeDtypeStruct((B, H), jnp.float32),
        grid=grid,
        in_specs=[
            # x streams per batch tile; all weights/biases are resident
            # (constant block index across the grid axis -> fetched once).
            pl.BlockSpec((tb, S), lambda i: (i, 0)),
            pl.BlockSpec(fp["wf"].shape, lambda i: (0, 0)),
            pl.BlockSpec(fp["w_va"].shape, lambda i: (0, 0)),
            pl.BlockSpec(fp["w_out"].shape, lambda i: (0, 0)),
            pl.BlockSpec(fp["b_all"].shape, lambda i: (0, 0)),
        ],
        out_specs=pl.BlockSpec((tb, H), lambda i: (i, 0)),
        compiler_params=pltpu.CompilerParams(
            dimension_semantics=("parallel",)),
    )(x, fp["wf"], fp["w_va"], fp["w_out"], fp["b_all"])

    return q128[:, :A]


# ----------------------------------------------------------------------------
# Deterministic parameter construction (mirrors the PyTorch __init__ shapes).
# Weights are stored TRANSPOSED vs. PyTorch: (in_features, out_features).
# ----------------------------------------------------------------------------
def _scale_noise(key, size):
    x = jax.random.normal(key, (size,), dtype=jnp.float32)
    return jnp.sign(x) * jnp.sqrt(jnp.abs(x))


def _noisy_linear_params(key, in_f, out_f, sigma_init=0.5):
    """Effective (training-mode) weight/bias of a NoisyLinear layer."""
    k_wmu, k_bmu, k_ein, k_eout, k_beps = jax.random.split(key, 5)
    mu_range = 1.0 / jnp.sqrt(jnp.float32(in_f))

    weight_mu = jax.random.uniform(k_wmu, (out_f, in_f), jnp.float32,
                                   -mu_range, mu_range)
    weight_sigma = jnp.full((out_f, in_f),
                            sigma_init / jnp.sqrt(jnp.float32(in_f)), jnp.float32)
    bias_mu = jax.random.uniform(k_bmu, (out_f,), jnp.float32, -mu_range, mu_range)
    bias_sigma = jnp.full((out_f,), sigma_init / jnp.sqrt(jnp.float32(out_f)),
                          jnp.float32)

    eps_in = _scale_noise(k_ein, in_f)
    eps_out = _scale_noise(k_eout, out_f)
    weight_eps = jnp.outer(eps_out, eps_in)
    bias_eps = _scale_noise(k_beps, out_f)

    w_eff = weight_mu + weight_sigma * weight_eps
    b_eff = bias_mu + bias_sigma * bias_eps
    return w_eff.T, b_eff.reshape(1, out_f)


def _linear_params(key, in_f, out_f):
    k_w, k_b = jax.random.split(key)
    bound = 1.0 / jnp.sqrt(jnp.float32(in_f))
    w = jax.random.uniform(k_w, (out_f, in_f), jnp.float32, -bound, bound)
    b = jax.random.uniform(k_b, (out_f,), jnp.float32, -bound, bound)
    return w.T, b.reshape(1, out_f)


def make_rainbow_params(key, state_dim, action_dim, hidden=HIDDEN):
    kf, kv1, kv2, ka1, ka2 = jax.random.split(key, 5)
    wf, bf = _linear_params(kf, state_dim, hidden)
    wv1, bv1 = _noisy_linear_params(kv1, hidden, hidden)
    wv2, bv2 = _noisy_linear_params(kv2, hidden, 1)
    wa1, ba1 = _noisy_linear_params(ka1, hidden, hidden)
    wa2, ba2 = _noisy_linear_params(ka2, hidden, action_dim)
    return dict(wf=wf, bf=bf, wv1=wv1, bv1=bv1, wv2=wv2, bv2=bv2,
                wa1=wa1, ba1=ba1, wa2=wa2, ba2=ba2)


def pack_params(p, action_dim, dtype=jnp.float32):
    """Fuse/pack raw per-layer params into the kernel's operand layout.

    dtype controls the MXU-operand precision of the three weight matrices
    (f32 by default; jnp.bfloat16 for the MXU-native fast path).  Biases stay
    f32 in all modes.  The dueling combine q = V + A - mean_a(A) is folded
    exactly into (w_out, b_out).
    """
    H = HIDDEN
    assert action_dim <= H, "action_dim must fit in the 128-lane output tile"

    # Hidden layers fused side by side: (128, 256) / (1, 256).
    w_va = jnp.concatenate([p["wv1"], p["wa1"]], axis=1)
    b_va = jnp.concatenate([p["bv1"], p["ba1"]], axis=1)

    # Dueling-combined output head (256, 128):
    #   rows [0, 128)   (value hidden vh):  wv2 replicated into lanes [0, A)
    #   rows [128, 256) (adv.  hidden ah):  wa2 centered over the action axis
    #   lanes [A, 128): zero weights + zero bias -> exact zeros, sliced away.
    wa2_centered = p["wa2"] - jnp.mean(p["wa2"], axis=1, keepdims=True)  # (H, A)
    ba2_centered = p["ba2"] - jnp.mean(p["ba2"], axis=1, keepdims=True)  # (1, A)

    w_out = jnp.zeros((2 * H, H), jnp.float32)
    w_out = w_out.at[0:H, 0:action_dim].set(
        jnp.broadcast_to(p["wv2"], (H, action_dim)))
    w_out = w_out.at[H:2 * H, 0:action_dim].set(wa2_centered)

    b_out = jnp.zeros((1, H), jnp.float32)
    b_out = b_out.at[:, 0:action_dim].set(p["bv2"] + ba2_centered)

    # Single packed bias row: [bf(128) | b_va(256) | b_out(128)] = (1, 512).
    b_all = jnp.concatenate([p["bf"], b_va, b_out], axis=1)

    return dict(wf=p["wf"].astype(dtype),
                w_va=w_va.astype(dtype),
                w_out=w_out.astype(dtype),
                b_all=b_all,                      # always f32
                action_dim=action_dim)


# ----------------------------------------------------------------------------
# Pure-JAX reference (unfused) for a sanity check.
# ----------------------------------------------------------------------------
def rainbow_ref(x, p):
    h = jnp.maximum(x @ p["wf"] + p["bf"], 0.0)
    v = jnp.maximum(h @ p["wv1"] + p["bv1"], 0.0) @ p["wv2"] + p["bv2"]
    a = jnp.maximum(h @ p["wa1"] + p["ba1"], 0.0) @ p["wa2"] + p["ba2"]
    return v + a - jnp.mean(a, axis=1, keepdims=True)


if __name__ == "__main__":
    STATE_DIM = 16
    ACTION_DIM = 8
    BATCH = 2

    key = jax.random.PRNGKey(0)
    k_params, k_x = jax.random.split(key)

    raw = make_rainbow_params(k_params, STATE_DIM, ACTION_DIM)
    x = jax.random.normal(k_x, (BATCH, STATE_DIM), dtype=jnp.float32)
    q_ref = rainbow_ref(x, raw)

    # f32 path: tight agreement with the unfused reference.
    fused_f32 = pack_params(raw, ACTION_DIM)
    q_f32 = jax.block_until_ready(rainbow_forward(x, fused_f32))
    assert q_f32.shape == (BATCH, ACTION_DIM)
    assert jnp.allclose(q_f32, q_ref, atol=1e-5, rtol=1e-5), (q_f32, q_ref)

    # bf16 operand path (MXU-native on v5e/v6e/v7x); f32 accumulate / bias /
    # ReLU, so only weight-rounding error remains -> loose tolerance.
    fused_bf16 = pack_params(raw, ACTION_DIM, dtype=jnp.bfloat16)
    q_bf16 = jax.block_until_ready(rainbow_forward(x, fused_bf16))
    assert q_bf16.shape == (BATCH, ACTION_DIM)
    assert jnp.allclose(q_bf16, q_ref, atol=5e-2, rtol=5e-2), (q_bf16, q_ref)

    print("KERNEL_OK")
</pallas_src>

<mosaic_0001>
module attributes {stable_mosaic.version = 11 : i64} {
  func.func @rainbow_kernel(%arg0: i32, %arg1: memref<8x16xf32, #tpu.memory_space<vmem>>, %arg2: memref<16x128xf32, #tpu.memory_space<vmem>>, %arg3: memref<128x256xf32, #tpu.memory_space<vmem>>, %arg4: memref<256x128xf32, #tpu.memory_space<vmem>>, %arg5: memref<1x512xf32, #tpu.memory_space<vmem>>, %arg6: memref<8x128xf32, #tpu.memory_space<vmem>>) attributes {dimension_semantics = [#tpu.dimension_semantics<parallel>], iteration_bounds = array<i64: 1>, scalar_prefetch = 0 : i64, scratch_operands = 0 : i64, tpu.core_type = #tpu.core_type<tc>, window_params = [{transform_indices = @transform_0, window_bounds = array<i64: 8, 16>}, {pipeline_mode = #tpu.pipeline_mode<synchronous>, transform_indices = @transform_1, window_bounds = array<i64: 16, 128>}, {pipeline_mode = #tpu.pipeline_mode<synchronous>, transform_indices = @transform_2, window_bounds = array<i64: 128, 256>}, {pipeline_mode = #tpu.pipeline_mode<synchronous>, transform_indices = @transform_3, window_bounds = array<i64: 256, 128>}, {pipeline_mode = #tpu.pipeline_mode<synchronous>, transform_indices = @transform_4, window_bounds = array<i64: 1, 512>}, {transform_indices = @transform_5, window_bounds = array<i64: 8, 128>}]} {
    %c0 = arith.constant 0 : index
    %c0_0 = arith.constant 0 : index
    %0 = vector.load %arg5[%c0, %c0_0] : memref<1x512xf32, #tpu.memory_space<vmem>>, vector<1x128xf32>
    %c0_1 = arith.constant 0 : index
    %c128 = arith.constant 128 : index
    %1 = vector.load %arg5[%c0_1, %c128] : memref<1x512xf32, #tpu.memory_space<vmem>>, vector<1x256xf32>
    %c0_2 = arith.constant 0 : index
    %c384 = arith.constant 384 : index
    %2 = vector.load %arg5[%c0_2, %c384] : memref<1x512xf32, #tpu.memory_space<vmem>>, vector<1x128xf32>
    %c0_3 = arith.constant 0 : index
    %c0_4 = arith.constant 0 : index
    %3 = vector.load %arg1[%c0_3, %c0_4] : memref<8x16xf32, #tpu.memory_space<vmem>>, vector<8x16xf32>
    %c0_5 = arith.constant 0 : index
    %c0_6 = arith.constant 0 : index
    %4 = vector.load %arg2[%c0_5, %c0_6] : memref<16x128xf32, #tpu.memory_space<vmem>>, vector<16x128xf32>
    %cst = arith.constant dense<0.000000e+00> : vector<8x128xf32>
    %5 = tpu.matmul %3, %4, %cst {dimension_numbers = #tpu.dot_dimension_numbers<[1], [0], [0], [1], [0, 0, 1, 1], [], []>} : vector<8x16xf32>, vector<16x128xf32>, vector<8x128xf32> -> vector<8x128xf32>
    %6 = vector.broadcast %0 : vector<1x128xf32> to vector<8x128xf32>
    %7 = arith.addf %5, %6 : vector<8x128xf32>
    %cst_7 = arith.constant 0.000000e+00 : f32
    %8 = vector.broadcast %cst_7 : f32 to vector<8x128xf32>
    %9 = arith.maximumf %7, %8 : vector<8x128xf32>
    %c0_8 = arith.constant 0 : index
    %c0_9 = arith.constant 0 : index
    %10 = vector.load %arg3[%c0_8, %c0_9] : memref<128x256xf32, #tpu.memory_space<vmem>>, vector<128x256xf32>
    %cst_10 = arith.constant dense<0.000000e+00> : vector<8x256xf32>
    %11 = tpu.matmul %9, %10, %cst_10 {dimension_numbers = #tpu.dot_dimension_numbers<[1], [0], [0], [1], [0, 0, 1, 1], [], []>} : vector<8x128xf32>, vector<128x256xf32>, vector<8x256xf32> -> vector<8x256xf32>
    %12 = vector.broadcast %1 : vector<1x256xf32> to vector<8x256xf32>
    %13 = arith.addf %11, %12 : vector<8x256xf32>
    %cst_11 = arith.constant 0.000000e+00 : f32
    %14 = vector.broadcast %cst_11 : f32 to vector<8x256xf32>
    %15 = arith.maximumf %13, %14 : vector<8x256xf32>
    %c0_12 = arith.constant 0 : index
    %c0_13 = arith.constant 0 : index
    %16 = vector.load %arg4[%c0_12, %c0_13] : memref<256x128xf32, #tpu.memory_space<vmem>>, vector<256x128xf32>
    %cst_14 = arith.constant dense<0.000000e+00> : vector<8x128xf32>
    %17 = tpu.matmul %15, %16, %cst_14 {dimension_numbers = #tpu.dot_dimension_numbers<[1], [0], [0], [1], [0, 0, 1, 1], [], []>} : vector<8x256xf32>, vector<256x128xf32>, vector<8x128xf32> -> vector<8x128xf32>
    %18 = vector.broadcast %2 : vector<1x128xf32> to vector<8x128xf32>
    %19 = arith.addf %17, %18 : vector<8x128xf32>
    %c0_15 = arith.constant 0 : index
    %c0_16 = arith.constant 0 : index
    %20 = vector.load %arg6[%c0_15, %c0_16] : memref<8x128xf32, #tpu.memory_space<vmem>>, vector<8x128xf32>
    tpu.vector_store %arg6[%c0_15, %c0_16], %19 {strides = array<i32>} : memref<8x128xf32, #tpu.memory_space<vmem>>, vector<8x128xf32>,
    return
  }
  func.func @transform_0(%arg0: i32) -> (i32, i32) {
    %c0_i32 = arith.constant 0 : i32
    %c0_i32_0 = arith.constant 0 : i32
    return %arg0, %c0_i32 : i32, i32
  }
  func.func @transform_1(%arg0: i32) -> (i32, i32) {
    %c0_i32 = arith.constant 0 : i32
    %c0_i32_0 = arith.constant 0 : i32
    %c0_i32_1 = arith.constant 0 : i32
    return %c0_i32, %c0_i32_0 : i32, i32
  }
  func.func @transform_2(%arg0: i32) -> (i32, i32) {
    %c0_i32 = arith.constant 0 : i32
    %c0_i32_0 = arith.constant 0 : i32
    %c0_i32_1 = arith.constant 0 : i32
    return %c0_i32, %c0_i32_0 : i32, i32
  }
  func.func @transform_3(%arg0: i32) -> (i32, i32) {
    %c0_i32 = arith.constant 0 : i32
    %c0_i32_0 = arith.constant 0 : i32
    %c0_i32_1 = arith.constant 0 : i32
    return %c0_i32, %c0_i32_0 : i32, i32
  }
  func.func @transform_4(%arg0: i32) -> (i32, i32) {
    %c0_i32 = arith.constant 0 : i32
    %c0_i32_0 = arith.constant 0 : i32
    %c0_i32_1 = arith.constant 0 : i32
    return %c0_i32, %c0_i32_0 : i32, i32
  }
  func.func @transform_5(%arg0: i32) -> (i32, i32) {
    %c0_i32 = arith.constant 0 : i32
    %c0_i32_0 = arith.constant 0 : i32
    return %arg0, %c0_i32 : i32, i32
  }
}

</mosaic_0001>

<bundles_post_ra>
// kernel: tpu_custom_call.1
= control target key start
LH: loop header
LB: loop body
LE: loop exit
PB: predicated region body
PF: predicated region fallthrough
CT: control target
= control target key end

     0   :  { %10 = vsyncpa [#allocation3], 0  ;;  %s540_s0 = inlined_call_operand.hbm [shape: f32[2,16], index: 0, kind: input, shape index: {}]   ;;  %s541_s1 = inlined_call_operand.hbm [shape: f32[16,128], index: 1, kind: input, shape index: {}]   ;;  %s542_s2 = inlined_call_operand.hbm [shape: f32[128,256], index: 2, kind: input, shape index: {}]   ;;  %s543_s3 = inlined_call_operand.hbm [shape: f32[256,128], index: 3, kind: input, shape index: {}]   ;;  %s544_s4 = inlined_call_operand.hbm [shape: f32[1,512], index: 4, kind: input, shape index: {}]   ;;  %s545_s5 = inlined_call_operand.hbm [shape: f32[2,128], index: 5, kind: output, shape index: {}]  }
   0x1   :  { %11 = vsyncpa [#allocation6], 0 }
   0x2   :  { %12 = vsyncpa [#allocation9], 0 }
   0x3   :  { %13 = vsyncpa [#allocation4], 0  ;;  %s31_s20 = sshll.u32 %s541_s1, 4  ;;  %s32_s20 = int_to_ptr.hbm [resolvable:$true] %s31_s20 }
   0x4   :  { %17 = vsyncadd [#allocation3], 96  ;;  %s474_s21 = smov [#allocation5]   ;;  %s57_s25 = sshll.u32 %s543_s3, 4  ;;  %s58_s25 = int_to_ptr.hbm [resolvable:$true] %s57_s25 }
   0x5   :  { %s33_s22 = sshll.u32 %s474_s21, 4  ;;  %s475_s26 = smov 128   ;;  %s34_s22 = int_to_ptr.vmem [resolvable:$true] %s33_s22 }
   0x6   :  { %s476_s27 = smov 8   ;;  %s477_s28 = smov [#allocation8]  }
   0x7   :  { %39 = dma.hbm_to_vmem [thread:$0]  %s32_s20, 256, %s34_s22, [#allocation6], %s475_s26, %s475_s26, %s476_s27  }
   0x8   :  { %s59_s29 = sshll.u32 %s477_s28, 4  ;;  %s18_s7 = sshll.u32 %s540_s0, 4  ;;  %s60_s29 = int_to_ptr.vmem [resolvable:$true] %s59_s29  ;;  %s19_s7 = int_to_ptr.hbm [resolvable:$true] %s18_s7 }
   0x9   :  { %65 = dma.hbm_to_vmem [thread:$0]  %s58_s25, 4096, %s60_s29, [#allocation9], %s475_s26, %s475_s26, %s476_s27  }
   0xa   :  { %s478_s1 = smov [#allocation2]   ;;  %s44_s3 = sshll.u32 %s542_s2, 4  ;;  %s45_s3 = int_to_ptr.hbm [resolvable:$true] %s44_s3 }
   0xb   :  { %s20_s8 = sshll.u32 %s478_s1, 4  ;;  %s479_s11 = smov 32   ;;  %s21_s8 = int_to_ptr.vmem [resolvable:$true] %s20_s8 }
   0xc   :  { %s480_s12 = smov 2   ;;  %s481_s13 = smov [#allocation7]  }
   0xd   :  { %26 = dma.hbm_to_vmem [thread:$0]  %s19_s7, 32, %s21_s8, [#allocation3], %s479_s11, %s479_s11, %s480_s12  }
   0xe   :  { %s46_s14 = sshll.u32 %s481_s13, 4  ;;  %s482_s0 = smov 256   ;;  %s47_s14 = int_to_ptr.vmem [resolvable:$true] %s46_s14 }
   0xf   :  { %s483_s15 = smov 16   ;;  %s71_s18 = sshll.u32 %s544_s4, 4  ;;  %s72_s18 = int_to_ptr.hbm [resolvable:$true] %s71_s18 }
  0x10   :  { %52 = dma.hbm_to_vmem [thread:$0]  %s45_s3, 4096, %s47_s14, [#allocation6], %s482_s0, %s482_s0, %s483_s15  }
  0x11   :  { %s484_s19 = smov [#allocation10]  }
  0x12   :  { %s73_s2 = sshll.u32 %s484_s19, 4  ;;  %s74_s2 = int_to_ptr.vmem [resolvable:$true] %s73_s2 }
  0x13   :  { %76 = dma.hbm_to_vmem [thread:$0]  %s72_s18, 64, %s74_s2, [#allocation9]  }
  0x14   :  { %466 = dma.done.wait [#allocation3], 128  }
  0x15   :  { %467 = vsyncadd [#allocation3], 4294967168 }
  0x16   :  { %468 = dma.done.wait [#allocation6], 4352  }
  0x17   :  { %469 = vsyncadd [#allocation6], 4294962944 }
  0x18   :  { %470 = dma.done.wait [#allocation9], 4160  }
  0x19   :  { %471 = vsyncadd [#allocation9], 4294963136  ;;  %v102_v0 = vld [vmem:[#allocation5 + $0x8] sm:$0xff]  ;;  %v101_v1 = vld [vmem:[#allocation5] sm:$0xff]  ;;  %vm106_vm0 = vcmask 130048  }
  0x1a   :  { %v100_v2 = vld [vmem:[#allocation2] sm:$0xff]  ;;  %124 = vmatpush.msra.mxu0 %v102_v0  ;;  %v161_v3 = vld [vmem:[#allocation7 + $0xf0] sm:$0xff]  ;;  %v162_v4 = vld [vmem:[#allocation7 + $0xf8] sm:$0xff] }
  0x1b   :  { %v159_v5 = vld [vmem:[#allocation7 + $0xe0] sm:$0xff]  ;;  %168 = vmatpush.msra.mxu1 %v161_v3  ;;  %188 = vmatpush.msra.mxu2 %v162_v4  ;;  %v160_v6 = vld [vmem:[#allocation7 + $0xe8] sm:$0xff]  ;;  %v157_v7 = vld [vmem:[#allocation7 + $0xd0] sm:$0xff] }
  0x1c   :  { %125 = vmatpush.msra.mxu0 %v101_v1  ;;  %v158_v8 = vld [vmem:[#allocation7 + $0xd8] sm:$0xff]  ;;  %v155_v9 = vld [vmem:[#allocation7 + $0xc0] sm:$0xff]  ;;  %v156_v10 = vld [vmem:[#allocation7 + $0xc8] sm:$0xff] }
  0x1d   :  { %307 = vmatmul.msk.f32.vlgmr.msra.gmra.mxu0 %vm106_vm0, %v100_v2  ;;  %169 = vmatpush.msra.mxu1 %v159_v5  ;;  %v153_v11 = vld [vmem:[#allocation7 + $0xb0] sm:$0xff]  ;;  %v154_v12 = vld [vmem:[#allocation7 + $0xb8] sm:$0xff]  ;;  %v151_v13 = vld [vmem:[#allocation7 + $0xa0] sm:$0xff] }
  0x1e   :  { %189 = vmatpush.msra.mxu2 %v160_v6  ;;  %v152_v14 = vld [vmem:[#allocation7 + $0xa8] sm:$0xff]  ;;  %v149_v15 = vld [vmem:[#allocation7 + $0x90] sm:$0xff]  ;;  %v150_v16 = vld [vmem:[#allocation7 + $0x98] sm:$0xff] }
  0x1f   :  { %170 = vmatpush.msra.mxu1 %v157_v7  ;;  %v147_v17 = vld [vmem:[#allocation7 + $0x80] sm:$0xff]  ;;  %v148_v18 = vld [vmem:[#allocation7 + $0x88] sm:$0xff]  ;;  %v145_v19 = vld [vmem:[#allocation7 + $0x70] sm:$0xff] }
  0x20   :  { %190 = vmatpush.msra.mxu2 %v158_v8  ;;  %v146_v20 = vld [vmem:[#allocation7 + $0x78] sm:$0xff]  ;;  %v143_v21 = vld [vmem:[#allocation7 + $0x60] sm:$0xff]  ;;  %v144_v22 = vld [vmem:[#allocation7 + $0x68] sm:$0xff] }
  0x21   :  { %171 = vmatpush.msra.mxu1 %v155_v9  ;;  %v141_v23 = vld [vmem:[#allocation7 + $0x50] sm:$0xff]  ;;  %v142_v24 = vld [vmem:[#allocation7 + $0x58] sm:$0xff]  ;;  %v139_v25 = vld [vmem:[#allocation7 + $0x40] sm:$0xff] }
  0x22   :  { %191 = vmatpush.msra.mxu2 %v156_v10  ;;  %v140_v26 = vld [vmem:[#allocation7 + $0x48] sm:$0xff]  ;;  %v137_v27 = vld [vmem:[#allocation7 + $0x30] sm:$0xff]  ;;  %v138_v28 = vld [vmem:[#allocation7 + $0x38] sm:$0xff] }
  0x23   :  { %172 = vmatpush.msra.mxu1 %v153_v11  ;;  %v135_v29 = vld [vmem:[#allocation7 + $0x20] sm:$0xff]  ;;  %v136_v30 = vld [vmem:[#allocation7 + $0x28] sm:$0xff]  ;;  %v133_v31 = vld [vmem:[#allocation7 + $0x10] sm:$0xff] }
  0x24   :  { %192 = vmatpush.msra.mxu2 %v154_v12  ;;  %v134_v32 = vld [vmem:[#allocation7 + $0x18] sm:$0xff]  ;;  %v131_v33 = vld [vmem:[#allocation7] sm:$0xff]  ;;  %v132_v34 = vld [vmem:[#allocation7 + $0x8] sm:$0xff] }
  0x25   :  { %173 = vmatpush.msra.mxu1 %v151_v13  ;;  %v225_v35 = vld [vmem:[#allocation8 + $0x78] sm:$0xff]  ;;  %v224_v36 = vld [vmem:[#allocation8 + $0x70] sm:$0xff]  ;;  %v223_v38 = vld [vmem:[#allocation8 + $0x68] sm:$0xff] }
  0x26   :  { %193 = vmatpush.msra.mxu2 %v152_v14  ;;  %245 = vmatpush.msra.mxu3 %v225_v35  ;;  %v241_v37 = vld [vmem:[#allocation8 + $0xf8] sm:$0xff]  ;;  %v240_v39 = vld [vmem:[#allocation8 + $0xf0] sm:$0xff]  ;;  %v239_v40 = vld [vmem:[#allocation8 + $0xe8] sm:$0xff] }
  0x27   :  { %174 = vmatpush.msra.mxu1 %v149_v15  ;;  %265 = vmatpush.msrb.mxu0 %v241_v37  ;;  %v222_v41 = vld [vmem:[#allocation8 + $0x60] sm:$0xff]  ;;  %v221_v43 = vld [vmem:[#allocation8 + $0x58] sm:$0xff]  ;;  %v220_v45 = vld [vmem:[#allocation8 + $0x50] sm:$0xff] }
  0x28   :  { %194 = vmatpush.msra.mxu2 %v150_v16  ;;  %246 = vmatpush.msra.mxu3 %v224_v36  ;;  %v238_v42 = vld [vmem:[#allocation8 + $0xe0] sm:$0xff]  ;;  %v237_v44 = vld [vmem:[#allocation8 + $0xd8] sm:$0xff]  ;;  %v236_v46 = vld [vmem:[#allocation8 + $0xd0] sm:$0xff] }
  0x29   :  { %175 = vmatpush.msra.mxu1 %v147_v17  ;;  %266 = vmatpush.msrb.mxu0 %v240_v39  ;;  %v219_v47 = vld [vmem:[#allocation8 + $0x48] sm:$0xff]  ;;  %v218_v49 = vld [vmem:[#allocation8 + $0x40] sm:$0xff]  ;;  %v217_v51 = vld [vmem:[#allocation8 + $0x38] sm:$0xff] }
  0x2a   :  { %195 = vmatpush.msra.mxu2 %v148_v18  ;;  %247 = vmatpush.msra.mxu3 %v223_v38  ;;  %v235_v48 = vld [vmem:[#allocation8 + $0xc8] sm:$0xff]  ;;  %v234_v50 = vld [vmem:[#allocation8 + $0xc0] sm:$0xff]  ;;  %v233_v52 = vld [vmem:[#allocation8 + $0xb8] sm:$0xff] }
  0x2b   :  { %176 = vmatpush.msra.mxu1 %v145_v19  ;;  %267 = vmatpush.msrb.mxu0 %v239_v40  ;;  %v216_v53 = vld [vmem:[#allocation8 + $0x30] sm:$0xff]  ;;  %v215_v55 = vld [vmem:[#allocation8 + $0x28] sm:$0xff]  ;;  %v214_v56 = vld [vmem:[#allocation8 + $0x20] sm:$0xff] }
  0x2c   :  { %196 = vmatpush.msra.mxu2 %v146_v20  ;;  %248 = vmatpush.msra.mxu3 %v222_v41  ;;  %v232_v54 = vld [vmem:[#allocation8 + $0xb0] sm:$0xff]  ;;  %v213_v57 = vld [vmem:[#allocation8 + $0x18] sm:$0xff]  ;;  %v320_v58 = vld [vmem:[#allocation10] ss:$0 sm:$0xff] }
  0x2d   :  { %177 = vmatpush.msra.mxu1 %v143_v21  ;;  %268 = vmatpush.msrb.mxu0 %v238_v42  ;;  %v212_v62 = vld [vmem:[#allocation8 + $0x10] sm:$0xff]  ;;  %v231_v63 = vld [vmem:[#allocation8 + $0xa8] sm:$0xff]  ;;  %v230_v1 = vld [vmem:[#allocation8 + $0xa0] sm:$0xff] }
  0x2e   :  { %197 = vmatpush.msra.mxu2 %v144_v22  ;;  %249 = vmatpush.msra.mxu3 %v221_v43  ;;  %v211_v0 = vld [vmem:[#allocation8 + $0x8] sm:$0xff]  ;;  %v210_v2 = vld [vmem:[#allocation8] sm:$0xff]  ;;  %v229_v3 = vld [vmem:[#allocation8 + $0x98] sm:$0xff] }
  0x2f   :  { %178 = vmatpush.msra.mxu1 %v141_v23  ;;  %269 = vmatpush.msrb.mxu0 %v237_v44  ;;  %v228_v4 = vld [vmem:[#allocation8 + $0x90] sm:$0xff]  ;;  %v227_v5 = vld [vmem:[#allocation8 + $0x88] sm:$0xff]  ;;  %v226_v6 = vld [vmem:[#allocation8 + $0x80] sm:$0xff] }
  0x30   :  { %198 = vmatpush.msra.mxu2 %v142_v24  ;;  %250 = vmatpush.msra.mxu3 %v220_v45  ;;  %v98_v7 = vld [vmem:[#allocation10 + $0x1] sm:$0x3]  ;;  %v321_v16 = vld [vmem:[#allocation10 + $0x3] ss:$0 sm:$0xff] }
  0x31   :  { %179 = vmatpush.msra.mxu1 %v139_v25  ;;  %270 = vmatpush.msrb.mxu0 %v236_v46  ;;  %v164_v8 = vperm.slane %v98_v7, 0  ;;  %v165_v12 = vperm.slane %v98_v7, 1 }
  0x32   :  { %199 = vmatpush.msra.mxu2 %v140_v26  ;;  %251 = vmatpush.msra.mxu3 %v219_v47 }
  0x33   :  { %180 = vmatpush.msra.mxu1 %v137_v27  ;;  %271 = vmatpush.msrb.mxu0 %v235_v48 }
  0x34   :  { %200 = vmatpush.msra.mxu2 %v138_v28  ;;  %252 = vmatpush.msra.mxu3 %v218_v49 }
  0x35   :  { %181 = vmatpush.msra.mxu1 %v135_v29  ;;  %272 = vmatpush.msrb.mxu0 %v234_v50 }
  0x36   :  { %201 = vmatpush.msra.mxu2 %v136_v30  ;;  %253 = vmatpush.msra.mxu3 %v217_v51 }
  0x37   :  { %182 = vmatpush.msra.mxu1 %v133_v31  ;;  %273 = vmatpush.msrb.mxu0 %v233_v52 }
  0x38   :  { %202 = vmatpush.msra.mxu2 %v134_v32  ;;  %254 = vmatpush.msra.mxu3 %v216_v53 }
  0x39   :  { %183 = vmatpush.msra.mxu1 %v131_v33  ;;  %274 = vmatpush.msrb.mxu0 %v232_v54 }
  0x3a   :  { %203 = vmatpush.msra.mxu2 %v132_v34  ;;  %255 = vmatpush.msra.mxu3 %v215_v55 }
  0x3b   :  { %275 = vmatpush.msrb.mxu0 %v231_v63 }
  0x3c   :  { %256 = vmatpush.msra.mxu3 %v214_v56 }
  0x3d   :  { %276 = vmatpush.msrb.mxu0 %v230_v1 }
  0x3e   :  { %257 = vmatpush.msra.mxu3 %v213_v57 }
  0x3f   :  { %277 = vmatpush.msrb.mxu0 %v229_v3 }
  0x40   :  { %258 = vmatpush.msra.mxu3 %v212_v62 }
  0x41   :  { %278 = vmatpush.msrb.mxu0 %v228_v4 }
  0x42   :  { %259 = vmatpush.msra.mxu3 %v211_v0 }
  0x43   :  { %279 = vmatpush.msrb.mxu0 %v227_v5 }
  0x44   :  { %260 = vmatpush.msra.mxu3 %v210_v2 }
  0x45   :  { %280 = vmatpush.msrb.mxu0 %v226_v6 }
  0x9a   :  { %v127_v59 = vpop.f32.mrf.mxu0 }
  0x9b   :  { %v128_v60 = vadd.f32 %v320_v58, %v127_v59 }
  0x9d   :  { %v130_v61 = vmax.f32 %v128_v60, 0.0 }
  0x9f   :  { %184 = vmatmul.f32.vlgmr.msra.gmra.mxu1 %v130_v61  ;;  %204 = vmatmul.f32.vlgmr.msra.gmra.mxu2 %v130_v61 }
 0x11c   :  { %v185_v9 = vpop.f32.mrf.mxu1 }
 0x11d   :  { %v186_v10 = vadd.f32 %v185_v9, %v164_v8 }
 0x11f   :  { %v208_v11 = vmax.f32 %v186_v10, 0.0 }
 0x121   :  { %261 = vmatmul.f32.vlgmr.msra.gmra.mxu3 %v208_v11 }
 0x122   :  { %v205_v13 = vpop.f32.mrf.mxu2 }
 0x123   :  { %v206_v14 = vadd.f32 %v205_v13, %v165_v12 }
 0x125   :  { %v209_v15 = vmax.f32 %v206_v14, 0.0 }
 0x127   :  { %281 = vmatmul.f32.vlgmr.msrb.gmra.mxu0 %v209_v15 }
 0x1a4   :  { %v262_v17 = vpop.f32.mrf.mxu3  ;;  %v282_v19 = vpop.f32.mrf.mxu0 }
 0x1a5   :  { %v263_v18 = vadd.f32 %v321_v16, %v262_v17 }
 0x1a7   :  { %v283_v20 = vadd.f32 %v282_v19, %v263_v18 }
 0x1a9   :  { %285 = vst [vmem:[#allocation11] sm:$0xff] %v283_v20 }
 0x1aa   :  { %289 = vsyncadd [#allocation4], 96  ;;  %s292_s21 = sshll.u32 %s545_s5, 4  ;;  %s485_s22 = smov [#allocation11]   ;;  %s293_s21 = int_to_ptr.hbm [resolvable:$true] %s292_s21 }
 0x1ab   :  { %s290_s23 = sshll.u32 %s485_s22, 4  ;;  %s291_s23 = int_to_ptr.vmem [resolvable:$true] %s290_s23 }
 0x1ac   :  { %298 = dma.vmem_to_hbm [thread:$0]  %s291_s23, 32, %s293_s21, [#allocation4], %s479_s11, %s479_s11, %s480_s12  }
 0x1ad   :  { %472 = dma.done.wait [#allocation4], 128  }
 0x1ae   :  { %473 = vsyncadd [#allocation4], 4294967168 }
 0x1af   :  { %303 = vsyncpa [#allocation3], 1 }
 0x1b0   :  { %304 = vsyncpa [#allocation6], 1 }
 0x1b1   :  { %305 = vsyncpa [#allocation9], 1 }
 0x1b2   :  { %306 = vsyncpa [#allocation4], 1 }

</bundles_post_ra>
